<compile_context>
chip_gen: v6e
topology: v6e:2x2x1
jax: 0.10.0
libtpu: 0.0.40
codegen_flags: <defaults>
</compile_context>

<pallas_src>
import jax
import jax.numpy as jnp
from jax.experimental import pallas as pl
from jax.experimental.pallas import tpu as pltpu


# ----------------------------------------------------------------------------
# Fused Pallas kernel: whole conditioned-linear chain, activation resident in VMEM.
# grid = (num_row_tiles, num_layers); layer axis is the fast (inner) axis.
# ----------------------------------------------------------------------------
def _fused_chain_kernel(x_ref, w_ref, s_ref, b_ref, o_ref, act_ref):
    # x_ref:   [tm, Dp]      input row tile (f32)
    # w_ref:   [1, Dp, Dp]   this layer's weights (bf16)
    # s_ref:   [1, 1, Dp]    folded scale  s' = 1 + scale        (f32)
    # b_ref:   [1, 1, Dp]    folded bias   b' = b*(1+scale)+shift (f32)
    # o_ref:   [tm, Dp]      output row tile (written once, at the last layer)
    # act_ref: [tm, Dp]      resident f32 activation (VMEM scratch)
    layer = pl.program_id(1)

    @pl.when(layer == 0)
    def _():
        act_ref[...] = x_ref[...].astype(jnp.float32)

    # MXU matmul: bf16 inputs, f32 accumulation.
    y = jnp.dot(
        act_ref[...].astype(jnp.bfloat16),
        w_ref[0],
        preferred_element_type=jnp.float32,
    )
    # Folded FiLM modulation + ReLU (single fused epilogue, f32).
    y = y * s_ref[0] + b_ref[0]
    act_ref[...] = jnp.maximum(y, 0.0)

    @pl.when(layer == pl.num_programs(1) - 1)
    def _():
        o_ref[...] = act_ref[...].astype(o_ref.dtype)


def _round_up(v, m):
    return (v + m - 1) // m * m


def fused_scale_shift_chain(x, w_stack, b_stack, scale, shift, *, tm_target=256):
    """Run the whole conditioned-linear chain in a single pallas_call.

    x:       [N, D]     f32
    w_stack: [L, D, D]  per-layer weights
    b_stack: [L, 1, D]  per-layer biases
    scale:   [1, D]     shared modulation (forwarded *args)
    shift:   [1, D]
    """
    N, D = x.shape
    L = w_stack.shape[0]
    dtype_out = x.dtype

    # --- fold the modulation once (wrapper-side, not per grid step) ----------
    scale = jnp.reshape(scale, (1, D)).astype(jnp.float32)
    shift = jnp.reshape(shift, (1, D)).astype(jnp.float32)
    s_prime = jnp.broadcast_to(1.0 + scale, (L, 1, D)).astype(jnp.float32)       # [L,1,D]
    b_prime = (b_stack.astype(jnp.float32) * (1.0 + scale) + shift)              # [L,1,D]

    # --- pad to TPU-friendly shapes: lanes multiple of 128, rows multiple of 8
    d_pad = _round_up(D, 128)
    n8 = _round_up(N, 8)
    if n8 >= tm_target:
        tm = tm_target
        n_pad = _round_up(n8, tm)
    else:
        tm = n8
        n_pad = n8

    x_p = jnp.pad(x, ((0, n_pad - N), (0, d_pad - D)))
    w_p = jnp.pad(w_stack, ((0, 0), (0, d_pad - D), (0, d_pad - D))).astype(jnp.bfloat16)
    s_p = jnp.pad(s_prime, ((0, 0), (0, 0), (0, d_pad - D)))
    b_p = jnp.pad(b_prime, ((0, 0), (0, 0), (0, d_pad - D)))

    # --- VMEM budget (double-buffered inputs + resident output + scratch) ----
    x_bytes = tm * d_pad * 4
    w_bytes = d_pad * d_pad * 2
    vec_bytes = d_pad * 4
    need = 2 * x_bytes + 2 * w_bytes + 4 * vec_bytes + 2 * x_bytes
    vmem_limit = int(min(max(2 * need, 4 << 20), 32 << 20))
    # TODO(synk): at production SD hidden sizes (D >= ~4096) the contraction
    # should additionally be K-tiled with an f32 accumulator to fit v7x's 64 MiB VMEM.

    grid = (n_pad // tm, L)

    out = pl.pallas_call(
        _fused_chain_kernel,
        out_shape=jax.ShapeDtypeStruct((n_pad, d_pad), dtype_out),
        grid_spec=pltpu.PrefetchScalarGridSpec(
            num_scalar_prefetch=0,
            grid=grid,
            in_specs=[
                pl.BlockSpec((tm, d_pad), lambda i, l: (i, 0)),          # x row tile
                pl.BlockSpec((1, d_pad, d_pad), lambda i, l: (l, 0, 0)),  # W[l]
                pl.BlockSpec((1, 1, d_pad), lambda i, l: (l, 0, 0)),      # s'[l]
                pl.BlockSpec((1, 1, d_pad), lambda i, l: (l, 0, 0)),      # b'[l]
            ],
            out_specs=pl.BlockSpec((tm, d_pad), lambda i, l: (i, 0)),
            scratch_shapes=[pltpu.VMEM((tm, d_pad), jnp.float32)],        # resident activation
        ),
        compiler_params=pltpu.CompilerParams(
            dimension_semantics=("parallel", "arbitrary"),
            vmem_limit_bytes=vmem_limit,
        ),
    )(x_p, w_p, s_p, b_p)

    return out[:N, :D]


# ----------------------------------------------------------------------------
# Layer + ArgSequential container (mirrors the PyTorch module semantics).
# ----------------------------------------------------------------------------
class PallasScaleShiftLinear:
    """A layer whose forward takes (x, scale, shift)."""

    def __init__(self, w, b):
        self.w = w          # [D, D]
        self.b = b          # [1, D]

    def __call__(self, x, scale, shift):
        return fused_scale_shift_chain(x, self.w[None], self.b[None], scale, shift)


class ArgSequential:
    """Exact semantics of PyTorch ArgSequential.forward, with a fused fast path."""

    def __init__(self, *layers):
        self.layers = list(layers)

    def __call__(self, x, *args, **kwargs):
        # Fast path: fuse the whole chain into one Pallas kernel when every
        # layer is a conditioned linear and the forwarded args are (scale, shift).
        if (
            self.layers
            and all(isinstance(l, PallasScaleShiftLinear) for l in self.layers)
            and len(args) == 2
            and not kwargs
        ):
            w_stack = jnp.stack([l.w for l in self.layers])   # [L, D, D]
            b_stack = jnp.stack([l.b for l in self.layers])   # [L, 1, D]
            return fused_scale_shift_chain(x, w_stack, b_stack, args[0], args[1])
        # Generic fallback: identical to the PyTorch container loop.
        for layer in self.layers:
            x = layer(x, *args, **kwargs)
        return x


# ----------------------------------------------------------------------------
# Pure-JAX reference (mirrors the ORIGINAL, unfolded epilogue; bf16 matmul
# inputs to match the kernel's MXU dtype).
# ----------------------------------------------------------------------------
def _ref_forward(x, params, scale, shift):
    for (w, b) in params:
        y = jnp.dot(
            x.astype(jnp.bfloat16),
            w.astype(jnp.bfloat16),
            preferred_element_type=jnp.float32,
        )
        y = (y + b) * (1.0 + scale) + shift
        x = jnp.maximum(y, 0.0)
    return x


if __name__ == "__main__":
    # Small shapes: batch=2, seq=8 -> N=16 tokens, hidden=32 (padded to 128 lanes).
    N, D = 2 * 8, 32
    n_layers = 2

    key = jax.random.PRNGKey(0)
    kx, ks, kh, *kws = jax.random.split(key, 3 + 2 * n_layers)

    x = jax.random.normal(kx, (N, D), dtype=jnp.float32)
    scale = 0.1 * jax.random.normal(ks, (1, D), dtype=jnp.float32)
    shift = 0.1 * jax.random.normal(kh, (1, D), dtype=jnp.float32)

    params = []
    layers = []
    for i in range(n_layers):
        w = jax.random.normal(kws[2 * i], (D, D), dtype=jnp.float32) / jnp.sqrt(D)
        b = 0.05 * jax.random.normal(kws[2 * i + 1], (1, D), dtype=jnp.float32)
        params.append((w, b))
        layers.append(PallasScaleShiftLinear(w, b))

    model = ArgSequential(*layers)

    out = model(x, scale, shift)
    out = jax.block_until_ready(out)

    ref = _ref_forward(x, params, scale, shift)
    assert out.shape == (N, D)
    assert jnp.allclose(out, ref, atol=2e-2, rtol=2e-2), "Pallas output mismatch vs reference"

    print("KERNEL_OK")
</pallas_src>

<mosaic_0001>
module attributes {stable_mosaic.version = 11 : i64} {
  func.func @_fused_chain_kernel(%arg0: i32, %arg1: i32, %arg2: memref<16x128xf32, #tpu.memory_space<vmem>>, %arg3: memref<1x128x128xbf16, #tpu.memory_space<vmem>>, %arg4: memref<1x1x128xf32, #tpu.memory_space<vmem>>, %arg5: memref<1x1x128xf32, #tpu.memory_space<vmem>>, %arg6: memref<16x128xf32, #tpu.memory_space<vmem>>, %arg7: memref<16x128xf32, #tpu.memory_space<vmem>>) attributes {dimension_semantics = [#tpu.dimension_semantics<parallel>, #tpu.dimension_semantics<arbitrary>], iteration_bounds = array<i64: 1, 2>, scalar_prefetch = 0 : i64, scratch_operands = 1 : i64, tpu.core_type = #tpu.core_type<tc>, window_params = [{transform_indices = @transform_0, window_bounds = array<i64: 16, 128>}, {transform_indices = @transform_1, window_bounds = array<i64: 1, 128, 128>}, {transform_indices = @transform_2, window_bounds = array<i64: 1, 1, 128>}, {transform_indices = @transform_3, window_bounds = array<i64: 1, 1, 128>}, {transform_indices = @transform_4, window_bounds = array<i64: 16, 128>}]} {
    %c0_i32 = arith.constant 0 : i32
    %0 = arith.cmpi eq, %arg1, %c0_i32 : i32
    %1 = arith.extui %0 : i1 to i32
    %c0_i32_0 = arith.constant 0 : i32
    %2 = arith.cmpi ne, %1, %c0_i32_0 : i32
    scf.if %2 {
      %c0_15 = arith.constant 0 : index
      %c0_16 = arith.constant 0 : index
      %22 = vector.load %arg2[%c0_15, %c0_16] : memref<16x128xf32, #tpu.memory_space<vmem>>, vector<16x128xf32>
      %c0_17 = arith.constant 0 : index
      %c0_18 = arith.constant 0 : index
      %23 = vector.load %arg7[%c0_17, %c0_18] : memref<16x128xf32, #tpu.memory_space<vmem>>, vector<16x128xf32>
      tpu.vector_store %arg7[%c0_17, %c0_18], %22 {strides = array<i32>} : memref<16x128xf32, #tpu.memory_space<vmem>>, vector<16x128xf32>,
    } else {
    }
    %c0 = arith.constant 0 : index
    %c0_1 = arith.constant 0 : index
    %3 = vector.load %arg7[%c0, %c0_1] : memref<16x128xf32, #tpu.memory_space<vmem>>, vector<16x128xf32>
    %4 = arith.truncf %3 : vector<16x128xf32> to vector<16x128xbf16>
    %c0_2 = arith.constant 0 : index
    %c0_3 = arith.constant 0 : index
    %c0_4 = arith.constant 0 : index
    %5 = vector.load %arg3[%c0_2, %c0_3, %c0_4] : memref<1x128x128xbf16, #tpu.memory_space<vmem>>, vector<1x128x128xbf16>
    %6 = vector.shape_cast %5 : vector<1x128x128xbf16> to vector<128x128xbf16>
    %cst = arith.constant dense<0.000000e+00> : vector<16x128xf32>
    %7 = tpu.matmul %4, %6, %cst {dimension_numbers = #tpu.dot_dimension_numbers<[1], [0], [0], [1], [0, 0, 1, 1], [], []>} : vector<16x128xbf16>, vector<128x128xbf16>, vector<16x128xf32> -> vector<16x128xf32>
    %c0_5 = arith.constant 0 : index
    %c0_6 = arith.constant 0 : index
    %c0_7 = arith.constant 0 : index
    %8 = vector.load %arg4[%c0_5, %c0_6, %c0_7] : memref<1x1x128xf32, #tpu.memory_space<vmem>>, vector<1x1x128xf32>
    %9 = vector.shape_cast %8 : vector<1x1x128xf32> to vector<1x128xf32>
    %10 = vector.broadcast %9 : vector<1x128xf32> to vector<16x128xf32>
    %11 = arith.mulf %7, %10 : vector<16x128xf32>
    %c0_8 = arith.constant 0 : index
    %c0_9 = arith.constant 0 : index
    %c0_10 = arith.constant 0 : index
    %12 = vector.load %arg5[%c0_8, %c0_9, %c0_10] : memref<1x1x128xf32, #tpu.memory_space<vmem>>, vector<1x1x128xf32>
    %13 = vector.shape_cast %12 : vector<1x1x128xf32> to vector<1x128xf32>
    %14 = vector.broadcast %13 : vector<1x128xf32> to vector<16x128xf32>
    %15 = arith.addf %11, %14 : vector<16x128xf32>
    %cst_11 = arith.constant 0.000000e+00 : f32
    %16 = vector.broadcast %cst_11 : f32 to vector<16x128xf32>
    %17 = arith.maximumf %15, %16 : vector<16x128xf32>
    %c0_12 = arith.constant 0 : index
    %c0_13 = arith.constant 0 : index
    %18 = vector.load %arg7[%c0_12, %c0_13] : memref<16x128xf32, #tpu.memory_space<vmem>>, vector<16x128xf32>
    tpu.vector_store %arg7[%c0_12, %c0_13], %17 {strides = array<i32>} : memref<16x128xf32, #tpu.memory_space<vmem>>, vector<16x128xf32>,
    %c1_i32 = arith.constant 1 : i32
    %19 = arith.cmpi eq, %arg1, %c1_i32 : i32
    %20 = arith.extui %19 : i1 to i32
    %c0_i32_14 = arith.constant 0 : i32
    %21 = arith.cmpi ne, %20, %c0_i32_14 : i32
    scf.if %21 {
      %c0_15 = arith.constant 0 : index
      %c0_16 = arith.constant 0 : index
      %22 = vector.load %arg7[%c0_15, %c0_16] : memref<16x128xf32, #tpu.memory_space<vmem>>, vector<16x128xf32>
      %c0_17 = arith.constant 0 : index
      %c0_18 = arith.constant 0 : index
      %23 = vector.load %arg6[%c0_17, %c0_18] : memref<16x128xf32, #tpu.memory_space<vmem>>, vector<16x128xf32>
      tpu.vector_store %arg6[%c0_17, %c0_18], %22 {strides = array<i32>} : memref<16x128xf32, #tpu.memory_space<vmem>>, vector<16x128xf32>,
    } else {
    }
    return
  }
  func.func @transform_0(%arg0: i32, %arg1: i32) -> (i32, i32) {
    %c0_i32 = arith.constant 0 : i32
    %c0_i32_0 = arith.constant 0 : i32
    return %arg0, %c0_i32 : i32, i32
  }
  func.func @transform_1(%arg0: i32, %arg1: i32) -> (i32, i32, i32) {
    %c0_i32 = arith.constant 0 : i32
    %c0_i32_0 = arith.constant 0 : i32
    %c0_i32_1 = arith.constant 0 : i32
    return %arg1, %c0_i32, %c0_i32_0 : i32, i32, i32
  }
  func.func @transform_2(%arg0: i32, %arg1: i32) -> (i32, i32, i32) {
    %c0_i32 = arith.constant 0 : i32
    %c0_i32_0 = arith.constant 0 : i32
    %c0_i32_1 = arith.constant 0 : i32
    return %arg1, %c0_i32, %c0_i32_0 : i32, i32, i32
  }
  func.func @transform_3(%arg0: i32, %arg1: i32) -> (i32, i32, i32) {
    %c0_i32 = arith.constant 0 : i32
    %c0_i32_0 = arith.constant 0 : i32
    %c0_i32_1 = arith.constant 0 : i32
    return %arg1, %c0_i32, %c0_i32_0 : i32, i32, i32
  }
  func.func @transform_4(%arg0: i32, %arg1: i32) -> (i32, i32) {
    %c0_i32 = arith.constant 0 : i32
    %c0_i32_0 = arith.constant 0 : i32
    return %arg0, %c0_i32 : i32, i32
  }
}

</mosaic_0001>

<bundles_post_ra>
// kernel: tpu_custom_call.1
= control target key start
LH: loop header
LB: loop body
LE: loop exit
PB: predicated region body
PF: predicated region fallthrough
CT: control target
= control target key end

     0   :  { %9 = vsyncpa [#allocation4], 0  ;;  %s1014_s0 = inlined_call_operand.hbm [shape: f32[16,128], index: 0, kind: input, shape index: {}]   ;;  %s1015_s1 = inlined_call_operand.hbm [shape: bf16[2,128,128], index: 1, kind: input, shape index: {}]   ;;  %s1016_s2 = inlined_call_operand.vmem [shape: f32[2,1,128], index: 2, kind: input, shape index: {}]   ;;  %s1017_s3 = inlined_call_operand.vmem [shape: f32[2,1,128], index: 3, kind: input, shape index: {}]   ;;  %s1018_s4 = inlined_call_operand.hbm [shape: f32[16,128], index: 4, kind: output, shape index: {}]  }
   0x1   :  { %10 = vsyncpa [#allocation7], 0 }
   0x2   :  { %12 = vsyncpa [#allocation7 + $0x1], 0 }
   0x3   :  { %13 = vsyncpa [#allocation5], 0  ;;  %s845_s15 = smov 0   ;;  %s847_s16 = smov 0  }
   0x4   :  { %s849_s17 = smov 0   ;;  %s851_s18 = smov 0  }
   0x5   :  { %s853_s19 = smov 0   ;;  %s855_s20 = smov 0  }
   0x6 LB: > { %s526_s21 = sadd.s32 4294967295, %s807_s20   ;;  %p77_p0 = scmp.ne.s32.totalorder %s791_s16, %s787_s15  ;;  %s807_s20 = sphi %s855_s20, %s19_s20   ;;  %s803_s19 = sphi %s853_s19, %s1029_s19   ;;  %s799_s18 = sphi %s851_s18, %s1028_s18   ;;  %s795_s17 = sphi %s849_s17, %s1027_s17   ;;  %s791_s16 = sphi %s847_s16, %s1026_s16   ;;  %s787_s15 = sphi %s845_s15, %s1025_s15  }
   0x7   : > { %p877_p1 = scmp.eq.s32.totalorder %s526_s21, 0  ;;  %p527_p2 = scmp.ge.s32.totalorder %s807_s20, 1 }
   0x8   : > { %p166_p3 = scmp.lt.s32.totalorder %s807_s20, 3  ;;  %s809_s25 = smov [#allocation3]  }
   0x9   : > { %p885_p4 = por %p877_p1, %p77_p0  ;;  %s181_s26 = sshll.u32 %s809_s25, 4  ;;  %s182_s26 = int_to_ptr.vmem [resolvable:$true] %s181_s26 }
   0xa   : > { %p889_p5 = pnand %p527_p2, %p166_p3  ;;  %s28_s28 = sadd.s32 1, %s803_s19 }
   0xb   : > { %s682_s29 = scalar_lea.vmem %s182_s26, 256  ;;  %p690_p12 = scmp.lt.s32.totalorder %s182_s26, %s182_s26 }
   0xc   : > { %p592_p6 = pneg %p889_p5  ;;  %p683_p9 = scmp.ne.s32.totalorder %s182_s26, %s682_s29 }
   0xd   : > { %p691_p13 = scmp.lt.s32.totalorder %s682_s29, %s682_s29 }
   0xe   : > { %p897_p7 = pnand %p592_p6, %p877_p1 }
   0xf   : > { %p692_p0 = por %p691_p13, %p690_p12 }
  0x10   : > { %p673_p8 = pneg %p897_p7 }
  0x12   : > { %p685_p10 = pnand %p683_p9, %p673_p8 }
  0x14   : > { %p686_p11 = pneg %p685_p10 }
  0x16   : > { %p693_p2 = pnand %p692_p0, %p686_p11 }
  0x18   : > { %696 = shalt.err (!%p693_p2)
}
  0x19   : > { %s810_s30 = smov 128   ;;  %s811_s5 = smov 8  }
  0x1a   : > { %595 = dma.hbm_to_vmem [thread:$0]  (!%p897_p7), %s1014_s0, 256, %s182_s26, [#allocation4], %s810_s30, %s810_s30, %s811_s5  }
  0x1b   : > { %p29_p3 = scmp.ge.s32.totalorder %s28_s28, 2  ;;  %s64_s8 = sadd.s32 1, %s795_s17 }
  0x1c   : > { %p71_p6 = scmp.ne.s32.totalorder %s795_s17, %s791_s16  ;;  %p72_p8 = scmp.eq.s32.totalorder %s807_s20, 0 }
  0x1d   : > { %s1031_s28 = smov (%p29_p3, %s28_s28), 0  ;;  %p601_p10 = scmp.lt.s32.totalorder %s807_s20, 2 }
  0x1e   : > { %p73_p9 = por %p72_p8, %p71_p6  ;;  %s61_s9 = ssub.s32 %s803_s19, %s1031_s28 }
  0x1f   : > { %s195_s10 = sand.u32 1, %s795_s17   ;;  %p62_p11 = scmp.eq.s32.totalorder %s61_s9, 0 }
  0x20   : > { %s530_s11 = sshll.u32 %s195_s10, 6  ;;  %s552_s12 = sshll.u32 %s803_s19, 10 }
  0x21   : > { %s921_s13 = scalar_select %p62_p11, %s795_s17, %s64_s8  }
  0x22   : > { %s205_s25 = scalar_lea.hbm %s1015_s1, %s552_s12  ;;  %s199_s26 = scalar_lea.vmem [#allocation6], %s530_s11 }
  0x23   : > { %s206_s27 = sshll.u32 %s199_s26, 4  ;;  %p926_p7 = pnand %p601_p10, %p73_p9  ;;  %s207_s27 = int_to_ptr.vmem [resolvable:$true] %s206_s27 }
  0x24   : > { %s196_s30 = scalar_lea.sflag [#allocation7], %s195_s10  ;;  %s710_s5 = scalar_lea.vmem %s207_s27, 1024 }
  0x25   : > { %p699_p12 = pneg %p926_p7  ;;  %p711_p13 = scmp.ne.s32.totalorder %s207_s27, %s710_s5 }
  0x26   : > { %s812_s6 = smov [#allocation6]  }
  0x27   : > { %p713_p0 = pnand %p711_p13, %p699_p12  ;;  %s715_s7 = sshll.u32 %s812_s6, 4  ;;  %s716_s7 = int_to_ptr.vmem [resolvable:$false] %s715_s7 }
  0x28   : > { %s717_s8 = scalar_lea.vmem %s716_s7, 2048  ;;  %p718_p3 = scmp.lt.s32.totalorder %s207_s27, %s716_s7 }
  0x29   : > { %p714_p2 = pneg %p713_p0  ;;  %p719_p6 = scmp.lt.s32.totalorder %s717_s8, %s710_s5 }
  0x2b   : > { %p720_p8 = por %p719_p6, %p718_p3 }
  0x2d   : > { %p721_p9 = pnand %p720_p8, %p714_p2 }
  0x2f   : > { %724 = shalt.err (!%p721_p9)
}
  0x30   : > { %s813_s9 = smov 64   ;;  %s814_s11 = smov 4  }
  0x31   : > { %599 = dma.hbm_to_vmem [thread:$0]  (!%p926_p7), %s205_s25, 1024, %s207_s27, %s196_s30, %s813_s9, %s813_s9, %s814_s11  }
  0x32   : > { %230 = sbr.rel (%p889_p5) target bundleno = 331 (0x14b), region = 36 }
  0x37   : > { %774 = dma.done.wait (%p877_p1), [#allocation4], 256  }
  0x38   : > { %776 = vsyncadd (%p877_p1), [#allocation4], 4294967040  ;;  %s236_s10 = sand.u32 1, %s791_s16  }
  0x39   : > { %s535_s12 = sshll.u32 %s236_s10, 6  ;;  %s237_s14 = scalar_lea.sflag [#allocation7], %s236_s10 }
  0x3a   : > { %s941_s15 = scalar_lea.vmem [#allocation6], %s535_s12 }
  0x3b   : > { %778 = dma.done.wait (%p885_p4), %s237_s14, 1024  }
  0x3c   : > { %780 = vsyncadd (%p885_p4), %s237_s14, 4294966272  ;;  %p267_p5 = scmp.lt.s32.totalorder %s799_s18, 1  ;;  %p536_p1 = scmp.ne.s32.totalorder %s799_s18, 0 }
  0x3e   : > { %s949_s24 = scalar_select %p267_p5, %s799_s18, 1 }
  0x3f   : > { %278 = sbr.rel (%p536_p1) target bundleno = 70 (0x46), region = 48 }
  0x40   : > { %s269_s26 = scalar_lea.vmem %s1016_s2, %s949_s24  ;;  %s272_s30 = scalar_lea.vmem %s1017_s3, %s949_s24 }
  0x44   : > { %v279_v0 = vld [vmem:[#allocation3] sm:$0xff]  ;;  %v280_v1 = vld [vmem:[#allocation3 + $0x8] sm:$0xff] }
  0x45   : > { %281 = vst [vmem:[#allocation2] sm:$0xff] %v279_v0  ;;  %282 = vst [vmem:[#allocation2 + $0x8] sm:$0xff] %v280_v1 }
  0x46 PF: > { %v663_v2 = vld [vmem:[%s941_s15 + $0x38] sm:$0xff]   ;;  %v815_v3 = vmov 0.0   ;;  %v664_v4 = vld [vmem:[%s941_s15 + $0x30] sm:$0xff]   ;;  %vm816_vm0 = vmmov 0   ;;  %v665_v5 = vld [vmem:[%s941_s15 + $0x28] sm:$0xff]   ;;  %p547_p4 = scmp.ne.s32.totalorder %s799_s18, 1 }
  0x47   : > { %562 = vmatprep.subr.bf16.mxu0 %v815_v3  ;;  %578 = vmatprep.mubr.msk.bf16.mxu0 %vm816_vm0, %v815_v3  ;;  %v666_v6 = vld [vmem:[%s941_s15 + $0x20] sm:$0xff]   ;;  %v667_v7 = vld [vmem:[%s941_s15 + $0x18] sm:$0xff]   ;;  %v668_v8 = vld [vmem:[%s941_s15 + $0x10] sm:$0xff]  }
  0x48   : > { %563 = vmatpush3.bf16.msra.mxu0 %v663_v2  ;;  %v669_v9 = vld [vmem:[%s941_s15 + $0x8] sm:$0xff]   ;;  %v670_v10 = vld [vmem:[%s941_s15] sm:$0xff]  }
  0x49   : > { %564 = vmatprep.subr.bf16.mxu0 %v815_v3  ;;  %v545_v14 = vld [vmem:[%s269_s26] ss:$0 sm:$0xff] }
  0x4a   : > { %v546_v16 = vld [vmem:[%s272_s30] ss:$0 sm:$0xff] }
  0x4c   : > { %565 = vmatpush3.bf16.msra.mxu0 %v664_v4  ;;  %v283_v11 = vld [vmem:[#allocation2] sm:$0xff]  ;;  %v284_v12 = vld [vmem:[#allocation2 + $0x8] sm:$0xff] }
  0x4d   : > { %566 = vmatprep.subr.bf16.mxu0 %v815_v3  ;;  %v285_v13 = vpack.c.bf16 %v284_v12, %v283_v11 }
  0x50   : > { %567 = vmatpush3.bf16.msra.mxu0 %v665_v5 }
  0x51   : > { %568 = vmatprep.subr.bf16.mxu0 %v815_v3 }
  0x54   : > { %569 = vmatpush3.bf16.msra.mxu0 %v666_v6 }
  0x55   : > { %570 = vmatprep.subr.bf16.mxu0 %v815_v3 }
  0x58   : > { %571 = vmatpush3.bf16.msra.mxu0 %v667_v7 }
  0x59   : > { %572 = vmatprep.subr.bf16.mxu0 %v815_v3 }
  0x5c   : > { %573 = vmatpush3.bf16.msra.mxu0 %v668_v8 }
  0x5d   : > { %574 = vmatprep.subr.bf16.mxu0 %v815_v3 }
  0x60   : > { %575 = vmatpush3.bf16.msra.mxu0 %v669_v9 }
  0x61   : > { %576 = vmatprep.subr.bf16.mxu0 %v815_v3 }
  0x64   : > { %577 = vmatpush3.bf16.msra.mxu0 %v670_v10 }
  0x67   : > { %579 = vmatmul.mubr.bf16.vlgmr.msra.gmra.mxu0 %v285_v13 }
 0x127   : > { %v384_v15 = vpop.f32.mrf.mxu0 }
 0x128   : > { %v398_v17 = vmul.f32 %v545_v14, %v384_v15 }
 0x129   : > { %v580_v18 = vpop.f32.mrf.mxu0 }
 0x12a   : > { %v407_v19 = vadd.f32 %v546_v16, %v398_v17 }
 0x12b   : > { %v387_v20 = vpop.f32.mrf.mxu0 }
 0x12c   : > { %v409_v21 = vmax.f32 %v407_v19, 0.0  ;;  %v399_v22 = vmul.f32 %v545_v14, %v387_v20 }
 0x12d   : > { %v581_v23 = vpop.f32.mrf.mxu0 }
 0x12e   : > { %411 = vst [vmem:[#allocation2] sm:$0xff] %v409_v21  ;;  %v408_v24 = vadd.f32 %v546_v16, %v399_v22  ;;  %416 = sbr.rel (%p547_p4) target bundleno = 315 (0x13b), region = 52 }
 0x130   : > { %v410_v25 = vmax.f32 %v408_v24, 0.0 }
 0x132   : > { %412 = vst [vmem:[#allocation2 + $0x8] sm:$0xff] %v410_v25 }
 0x135   : > { %v417_v26 = vld [vmem:[#allocation2] sm:$0xff] }
 0x136   : > { %419 = vst [vmem:[#allocation8] sm:$0xff] %v417_v26 }
 0x139   : > { %v418_v27 = vld [vmem:[#allocation2 + $0x8] sm:$0xff] }
 0x13a   : > { %420 = vst [vmem:[#allocation8 + $0x8] sm:$0xff] %v418_v27 }
 0x13b PF: > { %p981_p10 = scmp.eq.s32.totalorder %s526_s21, 1  ;;  %s817_s9 = smov [#allocation8]  }
 0x13c   : > { %s430_s11 = sshll.u32 %s817_s9, 4  ;;  %s431_s11 = int_to_ptr.vmem [resolvable:$true] %s430_s11 }
 0x13d   : > { %s725_s10 = scalar_lea.vmem %s431_s11, 256  ;;  %p732_p13 = scmp.lt.s32.totalorder %s431_s11, %s431_s11 }
 0x13e   : > { %p726_p11 = scmp.ne.s32.totalorder %s431_s11, %s725_s10  ;;  %p733_p0 = scmp.lt.s32.totalorder %s725_s10, %s725_s10 }
 0x140   : > { %p727_p7 = pnand %p726_p11, %p981_p10  ;;  %p734_p2 = por %p733_p0, %p732_p13 }
 0x142   : > { %p728_p12 = pneg %p727_p7 }
 0x144   : > { %p735_p3 = pnand %p734_p2, %p728_p12 }
 0x146   : > { %738 = shalt.err (!%p735_p3)
}
 0x147   : > { %s818_s18 = smov 128   ;;  %s819_s21 = smov 8  }
 0x148   : > { %589 = dma.vmem_to_hbm [thread:$0]  (%p981_p10), %s431_s11, 256, %s1018_s4, [#allocation5], %s818_s18, %s818_s18, %s819_s21  }
 0x149   : > { %782 = dma.done.wait (%p981_p10), [#allocation5], 256  }
 0x14a   : > { %784 = vsyncadd (%p981_p10), [#allocation5], 4294967040 }
 0x14b PF: > { %s19_s20 = sadd.s32 1, %s807_s20   ;;  %s1025_s15 = smov %s791_s16 }
 0x14c   : > { %p16_p6 = scmp.ge.s32.totalorder %s19_s20, 4   ;;  %s1026_s16 = smov %s795_s17 }
 0x14d   : > { %s1027_s17 = smov %s921_s13  ;;  %s1028_s18 = smov %s803_s19 }
 0x14e   : > { %s1029_s19 = smov %s1031_s28  ;;  %18 = sbr.rel (!%p16_p6) target bundleno = 6 (0x6), region = 94 }
 0x153   :  { %446 = vsyncpa [#allocation4], 1 }
 0x154   :  { %448 = vsyncpa [#allocation4 + $0x1], 1 }
 0x155   :  { %449 = vsyncpa [#allocation7], 1 }
 0x156   :  { %451 = vsyncpa [#allocation7 + $0x1], 1 }
 0x157   :  { %452 = vsyncpa [#allocation5], 1 }
 0x158   :  { %454 = vsyncpa [#allocation5 + $0x1], 1 }

</bundles_post_ra>
